<compile_context>
chip_gen: v7x
topology: tpu7x:2x2x1
jax: 0.10.0
libtpu: 0.0.40
codegen_flags: <defaults>
</compile_context>

<pallas_src>
import functools

import jax
import jax.numpy as jnp
from jax.experimental import pallas as pl
from jax.experimental.pallas import tpu as pltpu


def _round_up(v, m):
    return (v + m - 1) // m * m


_VMEM_LIMIT = 32 * 1024 * 1024      # scoped VMEM limit, valid on v5e/v6e/v7x
_TILE_BUDGET = 20 * 1024 * 1024     # bytes for double-buffered per-row streams
_TILE_CAP = 8192                    # rows


def _pick_tile(batch, bytes_per_row_buffered):
    """Pick a batch tile that amortizes per-step overhead but fits VMEM."""
    tb = _TILE_BUDGET // max(bytes_per_row_buffered, 1)
    tb = max(8, min(_TILE_CAP, tb))
    tb = (tb // 8) * 8
    return min(tb, _round_up(batch, 8))


# ---------------------------------------------------------------------------
# Kernels
# ---------------------------------------------------------------------------
def _logits_kernel(x_ref, w_ref, b_ref, o_ref):
    # logits tile = x_tile @ W + b   (MXU matmul, f32 accumulation)
    acc = jnp.dot(x_ref[...], w_ref[...], preferred_element_type=jnp.float32)
    o_ref[...] = (acc + b_ref[...]).astype(o_ref.dtype)


def _loss_partial_kernel(x_ref, w_ref, b_ref, labels_ref, psum_ref,
                         *, n_valid, tb):
    # Fused linear + per-tile CrossEntropy partial sum.  Each grid step owns
    # its own output block, so the grid axis is fully parallel (no carried
    # accumulator); the final mean is taken outside the kernel.
    i = pl.program_id(0)

    logits = jnp.dot(x_ref[...], w_ref[...],
                     preferred_element_type=jnp.float32) + b_ref[...]
    TB, C = logits.shape

    m = jnp.max(logits, axis=-1, keepdims=True)
    lse = jnp.log(jnp.sum(jnp.exp(logits - m), axis=-1, keepdims=True)) + m

    cls = jax.lax.broadcasted_iota(jnp.int32, (TB, C), 1)
    onehot = (cls == labels_ref[...]).astype(jnp.float32)
    correct = jnp.sum(logits * onehot, axis=-1, keepdims=True)

    # Mask rows past the real batch (ragged last block reads stale VMEM).
    row = jax.lax.broadcasted_iota(jnp.int32, (TB, 1), 0) + i * tb
    per_row = jnp.where(row < n_valid, lse - correct, jnp.float32(0.0))

    s = jnp.sum(per_row)
    psum_ref[...] = jnp.full(psum_ref.shape, s, dtype=psum_ref.dtype)


# ---------------------------------------------------------------------------
# Wrapper
# ---------------------------------------------------------------------------
def simple_classifier_forward(x, w, b, labels=None, *, tb=None):
    """x: [B, H] f32, w: [H, C] f32 (PyTorch weight transposed), b: [1, C] f32,
    labels: optional [B] int32.  Returns logits [B, C] or scalar mean CE loss."""
    B, H = x.shape
    C = w.shape[1]

    # Dropout: eval-mode identity (see TODO above).

    if labels is None:
        tile = tb if tb is not None else _pick_tile(B, 8 * (H + C))
        grid_n = pl.cdiv(B, tile)
        cost = pl.CostEstimate(
            flops=2 * B * H * C,
            transcendentals=0,
            bytes_accessed=4 * (B * H + H * C + C + B * C))
        return pl.pallas_call(
            _logits_kernel,
            out_shape=jax.ShapeDtypeStruct((B, C), x.dtype),
            grid=(grid_n,),
            in_specs=[
                pl.BlockSpec((tile, H), lambda i: (i, 0)),    # x tile
                pl.BlockSpec((H, C), lambda i: (0, 0)),       # W (resident)
                pl.BlockSpec((1, C), lambda i: (0, 0)),       # b (resident)
            ],
            out_specs=pl.BlockSpec((tile, C), lambda i: (i, 0)),
            compiler_params=pltpu.CompilerParams(
                dimension_semantics=("parallel",),
                vmem_limit_bytes=_VMEM_LIMIT),
            cost_estimate=cost,
        )(x, w, b)

    # Loss path: no output tile to double-buffer, so the tile can be larger.
    tile = tb if tb is not None else _pick_tile(B, 8 * (H + 1))
    grid_n = pl.cdiv(B, tile)
    labels2d = labels.reshape(B, 1).astype(jnp.int32)

    kernel = functools.partial(_loss_partial_kernel, n_valid=B, tb=tile)
    cost = pl.CostEstimate(
        flops=2 * B * H * C + 6 * B * C,
        transcendentals=B * C + B,
        bytes_accessed=4 * (B * H + H * C + C + B) + 4 * grid_n * 8 * 128)
    partials = pl.pallas_call(
        kernel,
        out_shape=jax.ShapeDtypeStruct((grid_n, 8, 128), jnp.float32),
        grid=(grid_n,),
        in_specs=[
            pl.BlockSpec((tile, H), lambda i: (i, 0)),        # x tile
            pl.BlockSpec((H, C), lambda i: (0, 0)),           # W (resident)
            pl.BlockSpec((1, C), lambda i: (0, 0)),           # b (resident)
            pl.BlockSpec((tile, 1), lambda i: (i, 0)),        # labels tile
        ],
        out_specs=pl.BlockSpec((1, 8, 128), lambda i: (i, 0, 0)),
        compiler_params=pltpu.CompilerParams(
            dimension_semantics=("parallel",),
            vmem_limit_bytes=_VMEM_LIMIT),
        cost_estimate=cost,
    )(x, w, b, labels2d)

    return jnp.sum(partials[:, 0, 0]) / jnp.float32(B)


# ---------------------------------------------------------------------------
# Test
# ---------------------------------------------------------------------------
def _ref_forward(x, w, b, labels=None):
    logits = x @ w + b
    if labels is None:
        return logits
    lse = jax.scipy.special.logsumexp(logits, axis=-1)
    return jnp.mean(lse - logits[jnp.arange(x.shape[0]), labels])


if __name__ == "__main__":
    key = jax.random.PRNGKey(0)
    H, C = 128, 10
    bound = 1.0 / (H ** 0.5)

    kx, kw, kb, kl, kx2, kl2 = jax.random.split(key, 6)
    w = jax.random.uniform(kw, (H, C), minval=-bound, maxval=bound,
                           dtype=jnp.float32)          # [H, C] = PyTorch W.T
    b = jax.random.uniform(kb, (1, C), minval=-bound, maxval=bound,
                           dtype=jnp.float32)

    # --- case 1: small batch, single tile, auto tile size -----------------
    B1 = 8
    x1 = jax.random.normal(kx, (B1, H), dtype=jnp.float32)
    labels1 = jax.random.randint(kl, (B1,), 0, C, dtype=jnp.int32)

    logits1 = jax.block_until_ready(simple_classifier_forward(x1, w, b))
    loss1 = jax.block_until_ready(simple_classifier_forward(x1, w, b, labels1))

    assert jnp.allclose(logits1, _ref_forward(x1, w, b), atol=1e-4, rtol=1e-4)
    assert jnp.allclose(loss1, _ref_forward(x1, w, b, labels1),
                        atol=1e-4, rtol=1e-4)

    # --- case 2: ragged batch (B not a multiple of tb), multi-tile grid ----
    B2 = 20
    x2 = jax.random.normal(kx2, (B2, H), dtype=jnp.float32)
    labels2 = jax.random.randint(kl2, (B2,), 0, C, dtype=jnp.int32)

    logits2 = jax.block_until_ready(
        simple_classifier_forward(x2, w, b, tb=8))
    loss2 = jax.block_until_ready(
        simple_classifier_forward(x2, w, b, labels2, tb=8))

    assert jnp.allclose(logits2, _ref_forward(x2, w, b), atol=1e-4, rtol=1e-4)
    assert jnp.allclose(loss2, _ref_forward(x2, w, b, labels2),
                        atol=1e-4, rtol=1e-4)

    print("KERNEL_OK")
</pallas_src>

<mosaic_0001>
module attributes {stable_mosaic.version = 11 : i64} {
  func.func @_logits_kernel(%arg0: i32, %arg1: memref<8x128xf32, #tpu.memory_space<vmem>>, %arg2: memref<128x10xf32, #tpu.memory_space<vmem>>, %arg3: memref<1x10xf32, #tpu.memory_space<vmem>>, %arg4: memref<8x10xf32, #tpu.memory_space<vmem>>) attributes {dimension_semantics = [#tpu.dimension_semantics<parallel>], iteration_bounds = array<i64: 1>, scalar_prefetch = 0 : i64, scratch_operands = 0 : i64, tpu.core_type = #tpu.core_type<tc>, window_params = [{transform_indices = @transform_0, window_bounds = array<i64: 8, 128>}, {pipeline_mode = #tpu.pipeline_mode<synchronous>, transform_indices = @transform_1, window_bounds = array<i64: 128, 10>}, {pipeline_mode = #tpu.pipeline_mode<synchronous>, transform_indices = @transform_2, window_bounds = array<i64: 1, 10>}, {transform_indices = @transform_3, window_bounds = array<i64: 8, 10>}]} {
    %c0 = arith.constant 0 : index
    %c0_0 = arith.constant 0 : index
    %0 = vector.load %arg1[%c0, %c0_0] : memref<8x128xf32, #tpu.memory_space<vmem>>, vector<8x128xf32>
    %c0_1 = arith.constant 0 : index
    %c0_2 = arith.constant 0 : index
    %1 = vector.load %arg2[%c0_1, %c0_2] : memref<128x10xf32, #tpu.memory_space<vmem>>, vector<128x10xf32>
    %cst = arith.constant dense<0.000000e+00> : vector<8x10xf32>
    %2 = tpu.matmul %0, %1, %cst {dimension_numbers = #tpu.dot_dimension_numbers<[1], [0], [0], [1], [0, 0, 1, 1], [], []>} : vector<8x128xf32>, vector<128x10xf32>, vector<8x10xf32> -> vector<8x10xf32>
    %c0_3 = arith.constant 0 : index
    %c0_4 = arith.constant 0 : index
    %3 = vector.load %arg3[%c0_3, %c0_4] : memref<1x10xf32, #tpu.memory_space<vmem>>, vector<1x10xf32>
    %4 = vector.broadcast %3 : vector<1x10xf32> to vector<8x10xf32>
    %5 = arith.addf %2, %4 : vector<8x10xf32>
    %c0_5 = arith.constant 0 : index
    %c0_6 = arith.constant 0 : index
    %6 = vector.load %arg4[%c0_5, %c0_6] : memref<8x10xf32, #tpu.memory_space<vmem>>, vector<8x10xf32>
    tpu.vector_store %arg4[%c0_5, %c0_6], %5 {strides = array<i32>} : memref<8x10xf32, #tpu.memory_space<vmem>>, vector<8x10xf32>,
    return
  }
  func.func @transform_0(%arg0: i32) -> (i32, i32) {
    %c0_i32 = arith.constant 0 : i32
    %c0_i32_0 = arith.constant 0 : i32
    return %arg0, %c0_i32 : i32, i32
  }
  func.func @transform_1(%arg0: i32) -> (i32, i32) {
    %c0_i32 = arith.constant 0 : i32
    %c0_i32_0 = arith.constant 0 : i32
    %c0_i32_1 = arith.constant 0 : i32
    return %c0_i32, %c0_i32_0 : i32, i32
  }
  func.func @transform_2(%arg0: i32) -> (i32, i32) {
    %c0_i32 = arith.constant 0 : i32
    %c0_i32_0 = arith.constant 0 : i32
    %c0_i32_1 = arith.constant 0 : i32
    return %c0_i32, %c0_i32_0 : i32, i32
  }
  func.func @transform_3(%arg0: i32) -> (i32, i32) {
    %c0_i32 = arith.constant 0 : i32
    %c0_i32_0 = arith.constant 0 : i32
    return %arg0, %c0_i32 : i32, i32
  }
}

</mosaic_0001>

<bundles_post_ra>
// kernel: tpu_custom_call.1
= control target key start
LH: loop header
LB: loop body
LE: loop exit
PB: predicated region body
PF: predicated region fallthrough
CT: control target
= control target key end

     0   :  { %v230_v3 = vmov 0.0|0.0   ;;  %vm231_vm0 = vmmov 0   ;;  %v232_v6 = vmov 0.0   ;;  %s320_s0 = inlined_call_operand.vmem [shape: f32[8,128], index: 0, kind: input, shape index: {}]   ;;  %s321_s1 = inlined_call_operand.vmem [shape: f32[128,10], index: 1, kind: input, shape index: {}]   ;;  %s322_s2 = inlined_call_operand.vmem [shape: f32[1,10], index: 2, kind: input, shape index: {}]   ;;  %s323_s3 = inlined_call_operand.hbm [shape: f32[8,10], index: 3, kind: output, shape index: {}]  }
   0x1   :  { %v16_v0 = vld [vmem:[%s321_s1] sm:$0xff]  ;;  %v17_v1 = vld [vmem:[%s321_s1 + $0x8] sm:$0xff]  ;;  %v18_v2 = vld [vmem:[%s321_s1 + $0x10] sm:$0xff]  ;;  %178 = vmatprep.subr.bf16.mxu0 %v230_v3  ;;  %175 = vmatprep.mubr.msk.f32.mxu0 %vm231_vm0, %v232_v6 }
   0x2   :  { %v179_v4 = vpack.c.bf16 %v17_v1, %v16_v0  ;;  %v19_v5 = vld [vmem:[%s321_s1 + $0x18] sm:$0xff]  ;;  %v20_v8 = vld [vmem:[%s321_s1 + $0x20] sm:$0xff]  ;;  %v21_v9 = vld [vmem:[%s321_s1 + $0x28] sm:$0xff] }
   0x3   :  { %v182_v7 = vpack.c.bf16 %v19_v5, %v18_v2 }
   0x4   :  { %180 = vmatpush3.bf16.msra.mxu0 %v179_v4 }
   0x5   :  { %181 = vmatprep.subr.bf16.mxu0 %v230_v3 }
   0x6   :  { %8 = vsyncpa [#allocation3], 0  ;;  %v185_v10 = vpack.c.bf16 %v21_v9, %v20_v8  ;;  %v22_v11 = vld [vmem:[%s321_s1 + $0x30] sm:$0xff]  ;;  %v23_v12 = vld [vmem:[%s321_s1 + $0x38] sm:$0xff]  ;;  %s233_s21 = smov [#allocation2]   ;;  %vm109_vm1 = vcmask 80896  }
   0x7   :  { %v188_v13 = vpack.c.bf16 %v23_v12, %v22_v11  ;;  %v24_v14 = vld [vmem:[%s321_s1 + $0x40] sm:$0xff]  ;;  %v25_v15 = vld [vmem:[%s321_s1 + $0x48] sm:$0xff]  ;;  %v26_v17 = vld [vmem:[%s321_s1 + $0x50] sm:$0xff]  ;;  %s117_s22 = sshll.u32 %s233_s21, 4  ;;  %s118_s22 = int_to_ptr.vmem [resolvable:$true] %s117_s22 }
   0x8   :  { %183 = vmatpush3.bf16.msra.mxu0 %v182_v7  ;;  %v191_v16 = vpack.c.bf16 %v25_v15, %v24_v14  ;;  %v27_v18 = vld [vmem:[%s321_s1 + $0x58] sm:$0xff]  ;;  %v28_v20 = vld [vmem:[%s321_s1 + $0x60] sm:$0xff]  ;;  %v29_v21 = vld [vmem:[%s321_s1 + $0x68] sm:$0xff]  ;;  %p211_p1 = scmp.lt.s32.totalorder %s118_s22, %s118_s22 }
   0x9   :  { %184 = vmatprep.subr.bf16.mxu0 %v230_v3  ;;  %v194_v19 = vpack.c.bf16 %v27_v18, %v26_v17  ;;  %v197_v22 = vpack.c.bf16 %v29_v21, %v28_v20  ;;  %v30_v23 = vld [vmem:[%s321_s1 + $0x70] sm:$0xff]  ;;  %v31_v24 = vld [vmem:[%s321_s1 + $0x78] sm:$0xff]  ;;  %v15_v26 = vld [vmem:[%s320_s0] sm:$0xff]  ;;  %s206_s1 = scalar_lea.vmem %s118_s22, 128 }
   0xa   :  { %v200_v25 = vpack.c.bf16 %v31_v24, %v30_v23  ;;  %v125_v27 = vld [vmem:[%s322_s2] ss:$0 sm:$0xff]  ;;  %p207_p0 = scmp.ne.s32.totalorder %s118_s22, %s206_s1  ;;  %p212_p2 = scmp.lt.s32.totalorder %s206_s1, %s206_s1 }
   0xc   :  { %186 = vmatpush3.bf16.msra.mxu0 %v185_v10  ;;  %p213_p3 = por %p212_p2, %p211_p1 }
   0xd   :  { %187 = vmatprep.subr.bf16.mxu0 %v230_v3 }
   0xe   :  { %p214_p4 = pnand %p213_p3, %p207_p0 }
  0x10   :  { %189 = vmatpush3.bf16.msra.mxu0 %v188_v13 }
  0x11   :  { %190 = vmatprep.subr.bf16.mxu0 %v230_v3 }
  0x14   :  { %192 = vmatpush3.bf16.msra.mxu0 %v191_v16 }
  0x15   :  { %193 = vmatprep.subr.bf16.mxu0 %v230_v3 }
  0x18   :  { %195 = vmatpush3.bf16.msra.mxu0 %v194_v19 }
  0x19   :  { %196 = vmatprep.subr.bf16.mxu0 %v230_v3 }
  0x1c   :  { %198 = vmatpush3.bf16.msra.mxu0 %v197_v22 }
  0x1d   :  { %199 = vmatprep.subr.bf16.mxu0 %v230_v3 }
  0x20   :  { %201 = vmatpush3.bf16.msra.mxu0 %v200_v25 }
  0x23   :  { %176 = vmatmul.mubr.f32.vlgmr.msra.gmra.mrb[0].mxu0 %v15_v26 }
  0xf6   :  { %v105_v28 = vpop.f32.mrb[0].mxu0 }
  0xf7   :  { %v106_v29 = vadd.f32 %v125_v27, %v105_v28  ;;  %v177_v30 = vpop.f32.mrb[1].mxu0 }
  0xf9   :  { %110 = vst.msk [vmem:[#allocation2] sm:$0xff] %vm109_vm1, %v106_v29 }
  0xfa   :  { %217 = shalt.err (!%p214_p4)
}
  0xfb   :  { %s218_s24 = scalar_lea.hbm %s323_s3, 128 }
  0xfc   :  { %p219_p5 = scmp.ne.s32.totalorder %s323_s3, %s218_s24  ;;  %p222_p6 = scmp.lt.u32.totalorder %s218_s24, %s323_s3 }
  0xfe   :  { %p224_p7 = pnand %p222_p6, %p219_p5 }
 0x100   :  { %227 = shalt.err (!%p224_p7)
}
 0x101   :  { %120 = dma.vmem_to_hbm [thread:$0]  %s118_s22, 128, %s323_s3, [#allocation3]  }
 0x102   :  { %228 = dma.done.wait [#allocation3], 128  }
 0x103   :  { %229 = vsyncadd [#allocation3], 4294967168 }
 0x104   :  { %124 = vsyncpa [#allocation3], 1 }

</bundles_post_ra>
